<compile_context>
chip_gen: v7x
topology: tpu7x:2x2x1
jax: 0.10.0
libtpu: 0.0.40
codegen_flags: <defaults>
</compile_context>

<pallas_src>
from math import gcd

import jax
import jax.numpy as jnp
from jax.experimental import pallas as pl
from jax.experimental.pallas import tpu as pltpu


def _packed_linear_kernel(w_ref, b_ref, x_ref, o_ref):
    # w_ref: (P*L, P*H) block-diagonal expanded weight (resident across steps)
    # b_ref: (1,   P*H) tiled bias                      (resident across steps)
    # x_ref: (blk, P*L) packed batch-row tile (lane-dense loads)
    # o_ref: (blk, P*H) packed output tile    (lane-dense, unmasked stores)
    acc = jnp.dot(x_ref[...], w_ref[...], preferred_element_type=jnp.float32)
    o_ref[...] = (acc + b_ref[...]).astype(o_ref.dtype)


def _pack_factor(horizon: int) -> int:
    """Smallest P such that P*horizon is a multiple of 128 (unmasked stores)."""
    return 128 // gcd(horizon, 128)


def _pick_block_rows(bp: int, target: int = 4096) -> int:
    """Packed-row (sublane) tile size.

    Large tiles amortize the ~0.35us/step grid overhead (target=4096 packed
    rows ~= 65536 batch rows ~= 12 MiB double-buffered in+out at L=16, H=8).
    When bp is large enough we also force >=4 grid steps so the v7x megacore
    'parallel' axis actually splits work across both TensorCores.  Always a
    multiple of 8 (sublane constraint) or the full extent.
    """
    if bp <= 8:
        return bp                                 # single full block, always legal
    quarter = max(8, (bp // 4) // 8 * 8)          # aim for >=4 grid steps
    return max(8, min(target, quarter))


def _autoregressive_forecasting_impl(x, weight, bias, *, block_rows=None):
    """y = x @ weight.T + bias  (identical math to the PyTorch module).

    x:      (B, lags)        float32
    weight: (horizon, lags)  float32   (PyTorch nn.Linear layout)
    bias:   (horizon,)       float32
    returns (B, horizon)
    """
    B, L = x.shape
    H = weight.shape[0]
    dtype = x.dtype

    # hidden_model is an empty nn.Sequential -> identity; only the Linear remains.

    P = _pack_factor(H)
    PL, PH = P * L, P * H

    # Pad batch to a multiple of the packing factor so the reshape is legal
    # (copy only happens on the ragged path; sliced back off at the end).
    B_pad = -(-B // P) * P
    if B_pad != B:
        x = jnp.pad(x, ((0, B_pad - B), (0, 0)))
    Bp = B_pad // P

    # Free row-major reshape: P consecutive batch rows packed onto the lane axis.
    x_packed = x.reshape(Bp, PL)

    # Block-diagonal expanded weight: Wexp[p*L + l, q*H + h] = (p==q) * W[h, l].
    wT = weight.T.astype(dtype)                          # (L, H)
    eyeP = jnp.eye(P, dtype=dtype)                       # (P, P)
    w_exp = (eyeP[:, None, :, None] * wT[None, :, None, :]).reshape(PL, PH)
    b_exp = jnp.tile(bias.astype(dtype), P).reshape(1, PH)

    if block_rows is None:
        blk = _pick_block_rows(Bp)
    else:
        blk = max(1, min(int(block_rows), Bp))
        if blk != Bp:
            blk = max(8, blk // 8 * 8)                   # obey (8,128) constraint

    grid = (pl.cdiv(Bp, blk),)

    # Advisory cost: honest bytes (dominant) + actual MXU flops of the call.
    cost = pl.CostEstimate(
        flops=2 * Bp * PL * PH,
        transcendentals=0,
        bytes_accessed=4 * (Bp * PL + PL * PH + PH + Bp * PH),
    )

    y_packed = pl.pallas_call(
        _packed_linear_kernel,
        out_shape=jax.ShapeDtypeStruct((Bp, PH), dtype),
        grid_spec=pltpu.PrefetchScalarGridSpec(
            num_scalar_prefetch=0,
            grid=grid,
            in_specs=[
                pl.BlockSpec((PL, PH), lambda i: (0, 0)),    # expanded weight (resident)
                pl.BlockSpec((1, PH), lambda i: (0, 0)),     # tiled bias      (resident)
                pl.BlockSpec((blk, PL), lambda i: (i, 0)),   # packed batch-row tile
            ],
            out_specs=pl.BlockSpec((blk, PH), lambda i: (i, 0)),
        ),
        compiler_params=pltpu.CompilerParams(
            dimension_semantics=("parallel",),      # splits grid across v7x TCs
            vmem_limit_bytes=48 * 1024 * 1024,      # big tiles; < 64 MiB v7x physical
        ),
        cost_estimate=cost,
    )(w_exp, b_exp, x_packed)

    # Free row-major reshape back to (B_pad, H); drop padded rows if any.
    y = y_packed.reshape(B_pad, H)
    if B_pad != B:
        y = y[:B]
    return y


# Jit so the (free) reshapes / tiny weight expansion fuse or constant-fold.
autoregressive_forecasting = jax.jit(
    _autoregressive_forecasting_impl, static_argnames=("block_rows",)
)


if __name__ == "__main__":
    # Small shapes consistent with the module's forward:
    #   lags = 16 (input features), horizon = 8 (forecast steps), batch = 8
    lags, horizon, batch = 16, 8, 8

    key = jax.random.PRNGKey(0)
    kx, kw, kb = jax.random.split(key, 3)

    x = jax.random.normal(kx, (batch, lags), dtype=jnp.float32)

    # Deterministic params matching nn.Linear's uniform(-1/sqrt(lags), 1/sqrt(lags))
    bound = 1.0 / (lags ** 0.5)
    weight = jax.random.uniform(kw, (horizon, lags), jnp.float32, -bound, bound)
    bias = jax.random.uniform(kb, (horizon,), jnp.float32, -bound, bound)

    # Tiny batch: single grid step, exercises the pad (B < P) + slice path.
    y = jax.block_until_ready(autoregressive_forecasting(x, weight, bias))
    y_ref = x @ weight.T + bias
    assert y.shape == (batch, horizon)
    assert jnp.allclose(y, y_ref, atol=1e-5, rtol=1e-5)

    # Larger batch: multiple grid steps (pipelining + megacore-parallel axis).
    big_batch = 512
    xb = jax.random.normal(kx, (big_batch, lags), dtype=jnp.float32)
    yb = jax.block_until_ready(
        autoregressive_forecasting(xb, weight, bias, block_rows=8))
    yb_ref = xb @ weight.T + bias
    assert yb.shape == (big_batch, horizon)
    assert jnp.allclose(yb, yb_ref, atol=1e-5, rtol=1e-5)

    # Batch not a multiple of the packing factor: pad + slice correctness path.
    odd_batch = 37
    xo = jax.random.normal(kx, (odd_batch, lags), dtype=jnp.float32)
    yo = jax.block_until_ready(autoregressive_forecasting(xo, weight, bias))
    yo_ref = xo @ weight.T + bias
    assert yo.shape == (odd_batch, horizon)
    assert jnp.allclose(yo, yo_ref, atol=1e-5, rtol=1e-5)

    print("KERNEL_OK")
</pallas_src>

<mosaic_0001>
module attributes {stable_mosaic.version = 11 : i64} {
  func.func @_packed_linear_kernel(%arg0: i32, %arg1: memref<256x128xf32, #tpu.memory_space<vmem>>, %arg2: memref<1x128xf32, #tpu.memory_space<vmem>>, %arg3: memref<1x256xf32, #tpu.memory_space<vmem>>, %arg4: memref<1x128xf32, #tpu.memory_space<vmem>>) attributes {dimension_semantics = [#tpu.dimension_semantics<parallel>], iteration_bounds = array<i64: 1>, scalar_prefetch = 0 : i64, scratch_operands = 0 : i64, tpu.core_type = #tpu.core_type<tc>, window_params = [{pipeline_mode = #tpu.pipeline_mode<synchronous>, transform_indices = @transform_0, window_bounds = array<i64: 256, 128>}, {pipeline_mode = #tpu.pipeline_mode<synchronous>, transform_indices = @transform_1, window_bounds = array<i64: 1, 128>}, {transform_indices = @transform_2, window_bounds = array<i64: 1, 256>}, {transform_indices = @transform_3, window_bounds = array<i64: 1, 128>}]} {
    %c0 = arith.constant 0 : index
    %c0_0 = arith.constant 0 : index
    %0 = vector.load %arg3[%c0, %c0_0] : memref<1x256xf32, #tpu.memory_space<vmem>>, vector<1x256xf32>
    %c0_1 = arith.constant 0 : index
    %c0_2 = arith.constant 0 : index
    %1 = vector.load %arg1[%c0_1, %c0_2] : memref<256x128xf32, #tpu.memory_space<vmem>>, vector<256x128xf32>
    %cst = arith.constant dense<0.000000e+00> : vector<1x128xf32>
    %2 = tpu.matmul %0, %1, %cst {dimension_numbers = #tpu.dot_dimension_numbers<[1], [0], [0], [1], [0, 0, 1, 1], [], []>} : vector<1x256xf32>, vector<256x128xf32>, vector<1x128xf32> -> vector<1x128xf32>
    %c0_3 = arith.constant 0 : index
    %c0_4 = arith.constant 0 : index
    %3 = vector.load %arg2[%c0_3, %c0_4] : memref<1x128xf32, #tpu.memory_space<vmem>>, vector<1x128xf32>
    %4 = arith.addf %2, %3 : vector<1x128xf32>
    %c0_5 = arith.constant 0 : index
    %c0_6 = arith.constant 0 : index
    %5 = vector.load %arg4[%c0_5, %c0_6] : memref<1x128xf32, #tpu.memory_space<vmem>>, vector<1x128xf32>
    tpu.vector_store %arg4[%c0_5, %c0_6], %4 {strides = array<i32>} : memref<1x128xf32, #tpu.memory_space<vmem>>, vector<1x128xf32>,
    return
  }
  func.func @transform_0(%arg0: i32) -> (i32, i32) {
    %c0_i32 = arith.constant 0 : i32
    %c0_i32_0 = arith.constant 0 : i32
    %c0_i32_1 = arith.constant 0 : i32
    return %c0_i32, %c0_i32_0 : i32, i32
  }
  func.func @transform_1(%arg0: i32) -> (i32, i32) {
    %c0_i32 = arith.constant 0 : i32
    %c0_i32_0 = arith.constant 0 : i32
    %c0_i32_1 = arith.constant 0 : i32
    return %c0_i32, %c0_i32_0 : i32, i32
  }
  func.func @transform_2(%arg0: i32) -> (i32, i32) {
    %c0_i32 = arith.constant 0 : i32
    %c0_i32_0 = arith.constant 0 : i32
    return %arg0, %c0_i32 : i32, i32
  }
  func.func @transform_3(%arg0: i32) -> (i32, i32) {
    %c0_i32 = arith.constant 0 : i32
    %c0_i32_0 = arith.constant 0 : i32
    return %arg0, %c0_i32 : i32, i32
  }
}

</mosaic_0001>

<bundles_post_ra>
// kernel: tile.8
= control target key start
LH: loop header
LB: loop body
LE: loop exit
PB: predicated region body
PF: predicated region fallthrough
CT: control target
= control target key end

     0   :  { %s28_s0 = inlined_call_operand.vmem [shape: f32[8], index: 0, kind: input, shape index: {}]   ;;  %s29_s1 = inlined_call_operand.vmem [shape: f32[16,8], index: 1, kind: output, shape index: {}]  }
   0x1   :  { %v4_v0 = vld [vmem:[%s28_s0] ss:$0 sm:$0xff] }
   0x2   :  { %5 = vst [vmem:[%s29_s1] sm:$0xff] %v4_v0  ;;  %8 = vst [vmem:[%s29_s1 + $0x8] sm:$0xff] %v4_v0 }

// kernel: tile.9
= control target key start
LH: loop header
LB: loop body
LE: loop exit
PB: predicated region body
PF: predicated region fallthrough
CT: control target
= control target key end

     0   :  { %s131_s10 = smov 120   ;;  %s132_s11 = smov 104   ;;  %vm3_vm0 = vcmask 64512   ;;  %vm9_vm1 = vcmask 1048512   ;;  %vm15_vm2 = vcmask 982912   ;;  %vm21_vm3 = vcmask 917312   ;;  %s207_s0 = inlined_call_operand.vmem [shape: f32[16,8], index: 0, kind: input, shape index: {}]   ;;  %s208_s1 = inlined_call_operand.vmem [shape: f32[1,128], index: 1, kind: output, shape index: {}]  }
   0x1   :  { %v101_v0 = vld [vmem:[%s207_s0 + $0xf] sm:$0x1]   ;;  %v103_v1 = vld [vmem:[%s207_s0 + $0xd] sm:$0x1]   ;;  %v102_v2 = vld [vmem:[%s207_s0 + $0xe] sm:$0x1]  }
   0x2   :  { %7 = vrot.lane.b32.xlu0 %v101_v0, %s131_s10  ;;  %19 = vrot.lane.b32.xlu1 %v103_v1, %s132_s11  ;;  %v104_v3 = vld [vmem:[%s207_s0 + $0xc] sm:$0x1]   ;;  %s133_s16 = smov 112   ;;  %s134_s17 = smov 96   ;;  %v105_v4 = vld [vmem:[%s207_s0 + $0xb] sm:$0x1]  }
   0x3   :  { %v106_v5 = vld [vmem:[%s207_s0 + $0xa] sm:$0x1]   ;;  %v2_v6 = vld [vmem:[%s207_s0] sm:$0x1]   ;;  %s135_s24 = smov 88   ;;  %s136_s25 = smov 80  }
   0x4   :  { %4 = vst.msk [vmem:[#allocation0] sm:$0x1] %vm3_vm0, %v2_v6   ;;  %v107_v7 = vld [vmem:[%s207_s0 + $0x9] sm:$0x1]   ;;  %v108_v8 = vld [vmem:[%s207_s0 + $0x8] sm:$0x1]  }
   0x5   :  { %s137_s30 = smov 72   ;;  %s138_s2 = smov 64   ;;  %v109_v9 = vld [vmem:[%s207_s0 + $0x7] sm:$0x1]   ;;  %v110_v10 = vld [vmem:[%s207_s0 + $0x6] sm:$0x1]  }
   0x6   :  { %13 = vrot.lane.b32.xlu0 %v102_v2, %s133_s16  ;;  %25 = vrot.lane.b32.xlu1 %v104_v3, %s134_s17  ;;  %s139_s7 = smov 56   ;;  %s140_s8 = smov 48   ;;  %v111_v11 = vld [vmem:[%s207_s0 + $0x5] sm:$0x1]   ;;  %v112_v12 = vld [vmem:[%s207_s0 + $0x4] sm:$0x1]  }
   0x7   :  { %s141_s13 = smov 40   ;;  %s142_s14 = smov 32   ;;  %v113_v13 = vld [vmem:[%s207_s0 + $0x3] sm:$0x1]   ;;  %v114_v14 = vld [vmem:[%s207_s0 + $0x2] sm:$0x1]  }
   0x8   :  { %s143_s19 = smov 24   ;;  %s144_s20 = smov 16   ;;  %v115_v15 = vld [vmem:[%s207_s0 + $0x1] sm:$0x1]   ;;  %vm27_vm4 = vcmask 851712   ;;  %vm33_vm5 = vcmask 786112  }
   0x9   :  { %s145_s0 = smov 8   ;;  %vm39_vm6 = vcmask 720512   ;;  %vm45_vm7 = vcmask 654912   ;;  %vm51_vm8 = vcmask 589312   ;;  %vm57_vm9 = vcmask 523712  }
   0xa   :  { %31 = vrot.lane.b32.xlu0 %v105_v4, %s135_s24  ;;  %37 = vrot.lane.b32.xlu1 %v106_v5, %s136_s25  ;;  %vm63_vm10 = vcmask 458112   ;;  %vm69_vm11 = vcmask 392512   ;;  %vm75_vm12 = vcmask 326912   ;;  %vm81_vm13 = vcmask 261312  }
   0xb   :  { %vm87_vm14 = vcmask 195712   ;;  %vm93_vm15 = vcmask 130112  }
   0xe   :  { %43 = vrot.lane.b32.xlu0 %v107_v7, %s137_s30  ;;  %49 = vrot.lane.b32.xlu1 %v108_v8, %s138_s2 }
  0x12   :  { %55 = vrot.lane.b32.xlu0 %v109_v9, %s139_s7  ;;  %61 = vrot.lane.b32.xlu1 %v110_v10, %s140_s8 }
  0x16   :  { %67 = vrot.lane.b32.xlu0 %v111_v11, %s141_s13  ;;  %73 = vrot.lane.b32.xlu1 %v112_v12, %s142_s14 }
  0x1a   :  { %79 = vrot.lane.b32.xlu0 %v113_v13, %s143_s19  ;;  %85 = vrot.lane.b32.xlu1 %v114_v14, %s144_s20 }
  0x1e   :  { %91 = vrot.lane.b32.xlu0 %v115_v15, %s145_s0 }
  0x74   :  { %v8_v16 = vpop.permute.xlu0 %7   ;;  %v20_v17 = vpop.permute.xlu1 %19  }
  0x75   :  { %10 = vst.msk [vmem:[#allocation0] sm:$0x1] %vm9_vm1, %v8_v16  }
  0x78   :  { %v14_v18 = vpop.permute.xlu0 %13   ;;  %v26_v19 = vpop.permute.xlu1 %25  }
  0x79   :  { %16 = vst.msk [vmem:[#allocation0] sm:$0x1] %vm15_vm2, %v14_v18  }
  0x7a   :  { %22 = vst.msk [vmem:[#allocation0] sm:$0x1] %vm21_vm3, %v20_v17  }
  0x7b   :  { %28 = vst.msk [vmem:[#allocation0] sm:$0x1] %vm27_vm4, %v26_v19  }
  0x7c   :  { %v32_v20 = vpop.permute.xlu0 %31   ;;  %v38_v21 = vpop.permute.xlu1 %37  }
  0x7d   :  { %34 = vst.msk [vmem:[#allocation0] sm:$0x1] %vm33_vm5, %v32_v20  }
  0x7e   :  { %40 = vst.msk [vmem:[#allocation0] sm:$0x1] %vm39_vm6, %v38_v21  }
  0x80   :  { %v44_v22 = vpop.permute.xlu0 %43   ;;  %v50_v23 = vpop.permute.xlu1 %49  }
  0x81   :  { %46 = vst.msk [vmem:[#allocation0] sm:$0x1] %vm45_vm7, %v44_v22  }
  0x82   :  { %52 = vst.msk [vmem:[#allocation0] sm:$0x1] %vm51_vm8, %v50_v23  }
  0x84   :  { %v56_v24 = vpop.permute.xlu0 %55   ;;  %v62_v25 = vpop.permute.xlu1 %61  }
  0x85   :  { %58 = vst.msk [vmem:[#allocation0] sm:$0x1] %vm57_vm9, %v56_v24  }
  0x86   :  { %64 = vst.msk [vmem:[#allocation0] sm:$0x1] %vm63_vm10, %v62_v25  }
  0x88   :  { %v68_v26 = vpop.permute.xlu0 %67   ;;  %v74_v27 = vpop.permute.xlu1 %73  }
  0x89   :  { %70 = vst.msk [vmem:[#allocation0] sm:$0x1] %vm69_vm11, %v68_v26  }
  0x8a   :  { %76 = vst.msk [vmem:[#allocation0] sm:$0x1] %vm75_vm12, %v74_v27  }
  0x8c   :  { %v80_v28 = vpop.permute.xlu0 %79   ;;  %v86_v29 = vpop.permute.xlu1 %85  }
  0x8d   :  { %82 = vst.msk [vmem:[#allocation0] sm:$0x1] %vm81_vm13, %v80_v28  }
  0x8e   :  { %88 = vst.msk [vmem:[#allocation0] sm:$0x1] %vm87_vm14, %v86_v29  }
  0x90   :  { %v92_v30 = vpop.permute.xlu0 %91  }
  0x91   :  { %94 = vst.msk [vmem:[#allocation0] sm:$0x1] %vm93_vm15, %v92_v30  }
  0x98   :  { %v98_v31 = vld [vmem:[#allocation0] sm:$0x1] }
  0x99   :  { %100 = vst [vmem:[%s208_s1] sm:$0x1] %v98_v31 }

// kernel: _autoregressive_forecasting_impl.1
= control target key start
LH: loop header
LB: loop body
LE: loop exit
PB: predicated region body
PF: predicated region fallthrough
CT: control target
= control target key end

     0   :  { %v49_v0 = vlaneseq  ;;  %s326_s0 = inlined_call_operand.vmem [shape: f32[256,128], index: 0, kind: input, shape index: {}]   ;;  %s327_s2 = inlined_call_operand.vmem [shape: f32[1,256], index: 2, kind: input, shape index: {}]   ;;  %s328_s1 = inlined_call_operand.vmem [shape: f32[1,128], index: 1, kind: input, shape index: {}]   ;;  %s329_s3 = inlined_call_operand.vmem [shape: f32[1,128], index: 3, kind: output, shape index: {}]  }
   0x1   :  { %v31_v1 = vld [vmem:[%s326_s0 + $0x80] sm:$0xff]  ;;  %v32_v2 = vld [vmem:[%s326_s0 + $0x88] sm:$0xff]  ;;  %v33_v6 = vld [vmem:[%s326_s0 + $0x90] sm:$0xff] }
   0x2   :  { %v15_v3 = vld [vmem:[%s326_s0] sm:$0xff]  ;;  %v169_v4 = vpack.c.bf16 %v32_v2, %v31_v1  ;;  %v16_v5 = vld [vmem:[%s326_s0 + $0x8] sm:$0xff]  ;;  %v34_v7 = vld [vmem:[%s326_s0 + $0x98] sm:$0xff]  ;;  %v50_v14 = vshrl.u32 %v49_v0, 7 }
   0x3   :  { %v171_v8 = vpack.c.bf16 %v16_v5, %v15_v3  ;;  %v173_v9 = vpack.c.bf16 %v34_v7, %v33_v6  ;;  %v17_v10 = vld [vmem:[%s326_s0 + $0x10] sm:$0xff]  ;;  %v18_v11 = vld [vmem:[%s326_s0 + $0x18] sm:$0xff]  ;;  %v35_v12 = vld [vmem:[%s326_s0 + $0xa0] sm:$0xff] }
   0x4   :  { %170 = vmatprep.subr.bf16.mxu0 %v169_v4  ;;  %v36_v13 = vld [vmem:[%s326_s0 + $0xa8] sm:$0xff]  ;;  %v175_v15 = vpack.c.bf16 %v18_v11, %v17_v10  ;;  %v19_v17 = vld [vmem:[%s326_s0 + $0x20] sm:$0xff]  ;;  %v37_v19 = vld [vmem:[%s326_s0 + $0xb0] sm:$0xff]  ;;  %v55_v21 = vsub.s32 1, %v50_v14  ;;  %v51_v52 = vsub.s32 0, %v50_v14 }
   0x5   :  { %172 = vmatpush3.bf16.msra.mxu0 %v171_v8  ;;  %v177_v16 = vpack.c.bf16 %v36_v13, %v35_v12  ;;  %v20_v18 = vld [vmem:[%s326_s0 + $0x28] sm:$0xff]  ;;  %v38_v20 = vld [vmem:[%s326_s0 + $0xb8] sm:$0xff]  ;;  %v21_v24 = vld [vmem:[%s326_s0 + $0x30] sm:$0xff] }
   0x6   :  { %174 = vmatprep.subr.bf16.mxu0 %v173_v9  ;;  %v179_v22 = vpack.c.bf16 %v20_v18, %v19_v17  ;;  %v181_v23 = vpack.c.bf16 %v38_v20, %v37_v19  ;;  %v22_v25 = vld [vmem:[%s326_s0 + $0x38] sm:$0xff]  ;;  %v39_v26 = vld [vmem:[%s326_s0 + $0xc0] sm:$0xff]  ;;  %v40_v27 = vld [vmem:[%s326_s0 + $0xc8] sm:$0xff] }
   0x7   :  { %v14_v28 = vld [vmem:[%s327_s2] sm:$0x3]  ;;  %v183_v30 = vpack.c.bf16 %v22_v25, %v21_v24  ;;  %v185_v31 = vpack.c.bf16 %v40_v27, %v39_v26  ;;  %v24_v33 = vld [vmem:[%s326_s0 + $0x48] sm:$0xff]  ;;  %v41_v34 = vld [vmem:[%s326_s0 + $0xd0] sm:$0xff] }
   0x8   :  { %v56_v29 = vrot.slane %v14_v28, %v55_v21  ;;  %v23_v32 = vld [vmem:[%s326_s0 + $0x40] sm:$0xff]  ;;  %v42_v35 = vld [vmem:[%s326_s0 + $0xd8] sm:$0xff]  ;;  %v25_v38 = vld [vmem:[%s326_s0 + $0x50] sm:$0xff]  ;;  %v52_v54 = vrot.slane %v14_v28, %v51_v52 }
   0x9   :  { %176 = vmatpush3.bf16.msra.mxu0 %v175_v15  ;;  %v187_v36 = vpack.c.bf16 %v24_v33, %v23_v32  ;;  %v189_v37 = vpack.c.bf16 %v42_v35, %v41_v34  ;;  %v26_v39 = vld [vmem:[%s326_s0 + $0x58] sm:$0xff]  ;;  %v43_v40 = vld [vmem:[%s326_s0 + $0xe0] sm:$0xff]  ;;  %v44_v41 = vld [vmem:[%s326_s0 + $0xe8] sm:$0xff] }
   0xa   :  { %178 = vmatprep.subr.bf16.mxu0 %v177_v16  ;;  %123 = vmatprep.mubr.f32.mxu0 %v56_v29  ;;  %v191_v42 = vpack.c.bf16 %v26_v39, %v25_v38  ;;  %v193_v43 = vpack.c.bf16 %v44_v41, %v43_v40  ;;  %v27_v44 = vld [vmem:[%s326_s0 + $0x60] sm:$0xff]  ;;  %v28_v45 = vld [vmem:[%s326_s0 + $0x68] sm:$0xff]  ;;  %v45_v46 = vld [vmem:[%s326_s0 + $0xf0] sm:$0xff] }
   0xb   :  { %v46_v47 = vld [vmem:[%s326_s0 + $0xf8] sm:$0xff]  ;;  %v195_v48 = vpack.c.bf16 %v28_v45, %v27_v44  ;;  %v29_v50 = vld [vmem:[%s326_s0 + $0x70] sm:$0xff]  ;;  %v47_v56 = vld [vmem:[%s328_s1] sm:$0x1] }
   0xc   :  { %v197_v49 = vpack.c.bf16 %v46_v47, %v45_v46  ;;  %v30_v51 = vld [vmem:[%s326_s0 + $0x78] sm:$0xff] }
   0xd   :  { %180 = vmatpush3.bf16.msra.mxu0 %v179_v22  ;;  %v199_v53 = vpack.c.bf16 %v30_v51, %v29_v50 }
   0xe   :  { %182 = vmatprep.subr.bf16.mxu0 %v181_v23 }
  0x11   :  { %184 = vmatpush3.bf16.msra.mxu0 %v183_v30 }
  0x12   :  { %186 = vmatprep.subr.bf16.mxu0 %v185_v31 }
  0x15   :  { %188 = vmatpush3.bf16.msra.mxu0 %v187_v36 }
  0x16   :  { %190 = vmatprep.subr.bf16.mxu0 %v189_v37 }
  0x19   :  { %192 = vmatpush3.bf16.msra.mxu0 %v191_v42 }
  0x1a   :  { %194 = vmatprep.subr.bf16.mxu0 %v193_v43 }
  0x1d   :  { %196 = vmatpush3.bf16.msra.mxu0 %v195_v48 }
  0x1e   :  { %198 = vmatprep.subr.bf16.mxu0 %v197_v49 }
  0x21   :  { %200 = vmatpush3.bf16.msra.mxu0 %v199_v53 }
  0x24   :  { %124 = vmatmul.mubr.f32.vlgmr.msra.gmra.mrb[0].mxu0 %v52_v54 }
  0xf7   :  { %v166_v55 = vpop.f32.mrb[0].mxu0 }
  0xf8   :  { %v167_v57 = vpop.f32.mrb[1].mxu0 }
  0xf9   :  { %v168_v58 = vadd.f32 %v167_v57, %v166_v55 }
  0xfb   :  { %v126_v59 = vadd.f32 %v168_v58, %v47_v56 }
  0xfd   :  { %129 = vst [vmem:[%s329_s3] sm:$0x1] %v126_v59 }

</bundles_post_ra>
